<compile_context>
chip_gen: v7x
topology: tpu7x:2x2x1
jax: 0.10.0
libtpu: 0.0.40
codegen_flags: <defaults>
</compile_context>

<pallas_src>
import functools

import jax
import jax.numpy as jnp
from jax.experimental import pallas as pl
from jax.experimental.pallas import tpu as pltpu


# ----------------------------------------------------------------------------
# Pallas kernel: one bidirectional LSTM layer over the whole sequence.
#   x_ref      : [T*B, D_in] f32   (time-major, row = (t, b))
#   m_ref      : [T, B, 1]   f32   attention mask
#   w_ih_ref   : [D_in, 8H]  bf16  (forward 4H | backward 4H), pre-transposed
#   w_hh_f_ref : [H, 4H]     bf16
#   w_hh_b_ref : [H, 4H]     bf16
#   b_ref      : [1, 8H]     f32   merged b_ih + b_hh, (forward | backward)
#   y_ref      : [T, B, 2H]  f32   output (forward half | backward half)
#   xg_ref     : [T*B, 8H]   f32   scratch: hoisted input-gate pre-activations
# ----------------------------------------------------------------------------
def _bilstm_layer_kernel(x_ref, m_ref, w_ih_ref, w_hh_f_ref, w_hh_b_ref, b_ref,
                         y_ref, xg_ref, *, T, B, H):
    # (1) Hoisted input projection for BOTH directions, bias folded in:
    #     one big MXU matmul instead of 2*T tiny per-step matmuls.
    xg_ref[...] = (
        jnp.dot(x_ref[...].astype(w_ih_ref.dtype), w_ih_ref[...],
                preferred_element_type=jnp.float32)
        + b_ref[...])

    # (2) Recurrent weights loaded once, outside the time loop.
    w_hh_f = w_hh_f_ref[...]
    w_hh_b = w_hh_b_ref[...]

    zero = jnp.zeros((B, H), jnp.float32)

    def lstm_step(h, c, gx, m_t, w_hh):
        # gx: [B, 4H] precomputed x@W_ih + b ; only h@W_hh remains in the loop.
        gates = gx + jnp.dot(h.astype(w_hh.dtype), w_hh,
                             preferred_element_type=jnp.float32)
        i = jax.nn.sigmoid(gates[:, 0:H])
        f = jax.nn.sigmoid(gates[:, H:2 * H])
        g = jnp.tanh(gates[:, 2 * H:3 * H])
        o = jax.nn.sigmoid(gates[:, 3 * H:4 * H])
        c_new = f * c + i * g
        h_new = o * jnp.tanh(c_new)
        keep = m_t > 0.5                       # [B, 1] bool, broadcasts over H
        h_out = jnp.where(keep, h_new, h)      # freeze state on padding
        c_out = jnp.where(keep, c_new, c)
        y_t = jnp.where(keep, h_new, jnp.zeros_like(h_new))  # zero padded out
        return h_out, c_out, y_t

    # (3) Fused forward/backward recurrence: one pass, two independent chains.
    def body(t, carry):
        h_f, c_f, h_b, c_b = carry
        tb = T - 1 - t
        rf = pl.multiple_of(t * B, B)
        rb = pl.multiple_of(tb * B, B)

        gx_f = xg_ref[pl.ds(rf, B), :]         # [B, 8H]
        gx_b = xg_ref[pl.ds(rb, B), :]

        h_f, c_f, y_f = lstm_step(h_f, c_f, gx_f[:, 0:4 * H], m_ref[t], w_hh_f)
        h_b, c_b, y_b = lstm_step(h_b, c_b, gx_b[:, 4 * H:8 * H], m_ref[tb],
                                  w_hh_b)

        # (4) Interleaved write into a single [T, B, 2H] output ref.
        y_ref[t, :, 0:H] = y_f
        y_ref[tb, :, H:2 * H] = y_b
        return (h_f, c_f, h_b, c_b)

    jax.lax.fori_loop(0, T, body, (zero, zero, zero, zero))


def _bilstm_layer(x_flat, m_tb1, layer_params, T, B):
    """x_flat: [T*B, D_in] f32 (time-major), m_tb1: [T, B, 1] f32 -> [T, B, 2H]."""
    H = layer_params["w_hh_f"].shape[0]
    vmem = pl.BlockSpec(memory_space=pltpu.MemorySpace.VMEM)
    kernel = functools.partial(_bilstm_layer_kernel, T=T, B=B, H=H)
    y = pl.pallas_call(
        kernel,
        out_shape=jax.ShapeDtypeStruct((T, B, 2 * H), jnp.float32),
        in_specs=[vmem] * 6,
        out_specs=vmem,
        scratch_shapes=[pltpu.VMEM((T * B, 8 * H), jnp.float32)],
        compiler_params=pltpu.CompilerParams(
            vmem_limit_bytes=32 * 1024 * 1024),
    )(x_flat, m_tb1, layer_params["w_ih"], layer_params["w_hh_f"],
      layer_params["w_hh_b"], layer_params["b"])
    return y


# ----------------------------------------------------------------------------
# Parameter init (deterministic, PyTorch-style uniform(-1/sqrt(H), 1/sqrt(H))).
# Weights are pre-transposed ([D_in, 4H] / [H, 4H]), the two directions'
# input-projection weights are packed side-by-side ([D_in, 8H]) and stored in
# bf16 for the MXU; merged biases stay f32.
# ----------------------------------------------------------------------------
def init_params(key, vocab_size, hidden_size, num_layers=3):
    H = hidden_size // 2
    k = 1.0 / float(H) ** 0.5
    keys = jax.random.split(key, 1 + num_layers)
    params = {
        "embedding": jax.random.normal(keys[0], (vocab_size, hidden_size),
                                       jnp.float32),
        "lstm": [],
    }
    for layer in range(num_layers):
        d_in = hidden_size  # bidirectional output 2H == hidden_size every layer
        lk = jax.random.split(keys[1 + layer], 8)
        u = lambda kk, shape: jax.random.uniform(kk, shape, jnp.float32, -k, k)
        w_ih_f = u(lk[0], (d_in, 4 * H))
        w_hh_f = u(lk[1], (H, 4 * H))
        b_f = u(lk[2], (1, 4 * H)) + u(lk[3], (1, 4 * H))
        w_ih_b = u(lk[4], (d_in, 4 * H))
        w_hh_b = u(lk[5], (H, 4 * H))
        b_b = u(lk[6], (1, 4 * H)) + u(lk[7], (1, 4 * H))
        params["lstm"].append({
            "w_ih": jnp.concatenate([w_ih_f, w_ih_b], axis=1).astype(
                jnp.bfloat16),                               # [D_in, 8H]
            "w_hh_f": w_hh_f.astype(jnp.bfloat16),           # [H, 4H]
            "w_hh_b": w_hh_b.astype(jnp.bfloat16),           # [H, 4H]
            "b": jnp.concatenate([b_f, b_b], axis=1),        # [1, 8H] f32
        })
    return params


# ----------------------------------------------------------------------------
# SeqEncoder.forward (use_bert=False branch).
# ----------------------------------------------------------------------------
@jax.jit
def seq_encoder_forward(params, input_ids, attention_mask):
    B, T = input_ids.shape
    D = params["embedding"].shape[1]

    # Time-major from the start: gather embedding as [T, B, D], mask inputs,
    # flatten to [T*B, D]; only one transpose back to batch-first at the end.
    ids_t = jnp.transpose(input_ids)                           # [T, B]
    mask_t = jnp.transpose(attention_mask).astype(jnp.float32)  # [T, B]
    inputs_t = params["embedding"][ids_t]                      # [T, B, D]
    x = (inputs_t * mask_t[..., None]).reshape(T * B, D)       # [T*B, D] f32
    m = mask_t[..., None]                                      # [T, B, 1]
    lengths = attention_mask.sum(axis=1).astype(jnp.int32)     # [B]

    y = None
    for layer_params in params["lstm"]:
        y = _bilstm_layer(x, m, layer_params, T, B)            # [T, B, 2H]
        x = y.reshape(T * B, 2 * layer_params["w_hh_f"].shape[0])
        # TODO(synk): inter-layer dropout (p=0.1) is a train-mode-only op;
        # skipped here (inference semantics).

    outputs = jnp.transpose(y, (1, 0, 2))                      # [B, T, hidden]
    # pad_packed_sequence returns (padded_outputs, lengths); the module names
    # the second value `h_n`, so we mirror that and return the lengths.
    return outputs, lengths


if __name__ == "__main__":
    B, T = 2, 8
    hidden_size = 32          # small stand-in for 768
    vocab_size = 64           # small stand-in for 28996

    root = jax.random.PRNGKey(0)
    k_param, k_ids = jax.random.split(root)

    params = init_params(k_param, vocab_size, hidden_size, num_layers=3)

    input_ids = jax.random.randint(k_ids, (B, T), 0, vocab_size, jnp.int32)
    lengths = jnp.array([8, 5], jnp.int32)
    attention_mask = (jnp.arange(T)[None, :] < lengths[:, None]).astype(
        jnp.float32)

    outputs, h_n = seq_encoder_forward(params, input_ids, attention_mask)
    jax.block_until_ready((outputs, h_n))

    assert outputs.shape == (B, T, hidden_size)
    assert h_n.shape == (B,)
    # padded positions must be exactly zero (packed-sequence semantics)
    assert float(jnp.abs(outputs[1, 5:, :]).max()) == 0.0

    print("KERNEL_OK")
</pallas_src>

<mosaic_0001>
module attributes {stable_mosaic.version = 11 : i64} {
  func.func @_bilstm_layer_kernel(%arg0: memref<16x32xf32, #tpu.memory_space<vmem>>, %arg1: memref<8x2x1xf32, #tpu.memory_space<vmem>>, %arg2: memref<32x128xbf16, #tpu.memory_space<vmem>>, %arg3: memref<16x64xbf16, #tpu.memory_space<vmem>>, %arg4: memref<16x64xbf16, #tpu.memory_space<vmem>>, %arg5: memref<1x128xf32, #tpu.memory_space<vmem>>, %arg6: memref<8x2x32xf32, #tpu.memory_space<vmem>>, %arg7: memref<16x128xf32, #tpu.memory_space<vmem>>) attributes {dimension_semantics = [], scalar_prefetch = 0 : i64, scratch_operands = 1 : i64, tpu.core_type = #tpu.core_type<tc>} {
    %c0 = arith.constant 0 : index
    %c0_0 = arith.constant 0 : index
    %0 = vector.load %arg0[%c0, %c0_0] : memref<16x32xf32, #tpu.memory_space<vmem>>, vector<16x32xf32>
    %1 = arith.truncf %0 : vector<16x32xf32> to vector<16x32xbf16>
    %c0_1 = arith.constant 0 : index
    %c0_2 = arith.constant 0 : index
    %2 = vector.load %arg2[%c0_1, %c0_2] : memref<32x128xbf16, #tpu.memory_space<vmem>>, vector<32x128xbf16>
    %cst = arith.constant dense<0.000000e+00> : vector<16x128xf32>
    %3 = tpu.matmul %1, %2, %cst {dimension_numbers = #tpu.dot_dimension_numbers<[1], [0], [0], [1], [0, 0, 1, 1], [], []>} : vector<16x32xbf16>, vector<32x128xbf16>, vector<16x128xf32> -> vector<16x128xf32>
    %c0_3 = arith.constant 0 : index
    %c0_4 = arith.constant 0 : index
    %4 = vector.load %arg5[%c0_3, %c0_4] : memref<1x128xf32, #tpu.memory_space<vmem>>, vector<1x128xf32>
    %5 = vector.broadcast %4 : vector<1x128xf32> to vector<16x128xf32>
    %6 = arith.addf %3, %5 : vector<16x128xf32>
    %c0_5 = arith.constant 0 : index
    %c0_6 = arith.constant 0 : index
    %7 = vector.load %arg7[%c0_5, %c0_6] : memref<16x128xf32, #tpu.memory_space<vmem>>, vector<16x128xf32>
    tpu.vector_store %arg7[%c0_5, %c0_6], %6 {strides = array<i32>} : memref<16x128xf32, #tpu.memory_space<vmem>>, vector<16x128xf32>,
    %c0_7 = arith.constant 0 : index
    %c0_8 = arith.constant 0 : index
    %8 = vector.load %arg3[%c0_7, %c0_8] : memref<16x64xbf16, #tpu.memory_space<vmem>>, vector<16x64xbf16>
    %c0_9 = arith.constant 0 : index
    %c0_10 = arith.constant 0 : index
    %9 = vector.load %arg4[%c0_9, %c0_10] : memref<16x64xbf16, #tpu.memory_space<vmem>>, vector<16x64xbf16>
    %cst_11 = arith.constant 0.000000e+00 : f32
    %10 = vector.broadcast %cst_11 : f32 to vector<2x16xf32>
    %c0_i32 = arith.constant 0 : i32
    %c8_i32 = arith.constant 8 : i32
    %11 = arith.addi %c0_i32, %c8_i32 : i32
    %c1_i32 = arith.constant 1 : i32
    %12:4 = scf.for %arg8 = %c0_i32 to %11 step %c1_i32 iter_args(%arg9 = %10, %arg10 = %10, %arg11 = %10, %arg12 = %10) -> (vector<2x16xf32>, vector<2x16xf32>, vector<2x16xf32>, vector<2x16xf32>)  : i32 {
      %c7_i32 = arith.constant 7 : i32
      %13 = arith.subi %c7_i32, %arg8 : i32
      %c2_i32 = arith.constant 2 : i32
      %14 = arith.muli %arg8, %c2_i32 : i32
      %15 = tpu.assume_multiple %14, 2 : i32
      %c2_i32_13 = arith.constant 2 : i32
      %16 = arith.muli %13, %c2_i32_13 : i32
      %17 = tpu.assume_multiple %16, 2 : i32
      %18 = arith.index_cast %15 : i32 to index
      %c0_14 = arith.constant 0 : index
      %19 = vector.load %arg7[%18, %c0_14] : memref<16x128xf32, #tpu.memory_space<vmem>>, vector<2x128xf32>
      %20 = arith.index_cast %17 : i32 to index
      %c0_15 = arith.constant 0 : index
      %21 = vector.load %arg7[%20, %c0_15] : memref<16x128xf32, #tpu.memory_space<vmem>>, vector<2x128xf32>
      %22 = vector.extract_strided_slice %19 {offsets = [0, 0], sizes = [2, 64], strides = [1, 1]} : vector<2x128xf32> to vector<2x64xf32>
      %23 = arith.index_cast %arg8 : i32 to index
      %c0_16 = arith.constant 0 : index
      %c0_17 = arith.constant 0 : index
      %24 = vector.load %arg1[%23, %c0_16, %c0_17] : memref<8x2x1xf32, #tpu.memory_space<vmem>>, vector<1x2x1xf32>
      %25 = vector.shape_cast %24 : vector<1x2x1xf32> to vector<2x1xf32>
      %26 = arith.truncf %arg9 : vector<2x16xf32> to vector<2x16xbf16>
      %cst_18 = arith.constant dense<0.000000e+00> : vector<2x64xf32>
      %27 = tpu.matmul %26, %8, %cst_18 {dimension_numbers = #tpu.dot_dimension_numbers<[1], [0], [0], [1], [0, 0, 1, 1], [], []>} : vector<2x16xbf16>, vector<16x64xbf16>, vector<2x64xf32> -> vector<2x64xf32>
      %28 = arith.addf %22, %27 : vector<2x64xf32>
      %29 = vector.extract_strided_slice %28 {offsets = [0, 0], sizes = [2, 16], strides = [1, 1]} : vector<2x64xf32> to vector<2x16xf32>
      %30 = arith.negf %29 : vector<2x16xf32>
      %31 = math.exp %30 : vector<2x16xf32>
      %cst_19 = arith.constant 1.000000e+00 : f32
      %32 = vector.broadcast %cst_19 : f32 to vector<2x16xf32>
      %33 = arith.addf %32, %31 : vector<2x16xf32>
      %34 = arith.divf %32, %33 : vector<2x16xf32>
      %35 = vector.extract_strided_slice %28 {offsets = [0, 16], sizes = [2, 16], strides = [1, 1]} : vector<2x64xf32> to vector<2x16xf32>
      %36 = arith.negf %35 : vector<2x16xf32>
      %37 = math.exp %36 : vector<2x16xf32>
      %cst_20 = arith.constant 1.000000e+00 : f32
      %38 = vector.broadcast %cst_20 : f32 to vector<2x16xf32>
      %39 = arith.addf %38, %37 : vector<2x16xf32>
      %40 = arith.divf %38, %39 : vector<2x16xf32>
      %41 = vector.extract_strided_slice %28 {offsets = [0, 32], sizes = [2, 16], strides = [1, 1]} : vector<2x64xf32> to vector<2x16xf32>
      %42 = math.tanh %41 : vector<2x16xf32>
      %43 = vector.extract_strided_slice %28 {offsets = [0, 48], sizes = [2, 16], strides = [1, 1]} : vector<2x64xf32> to vector<2x16xf32>
      %44 = arith.negf %43 : vector<2x16xf32>
      %45 = math.exp %44 : vector<2x16xf32>
      %cst_21 = arith.constant 1.000000e+00 : f32
      %46 = vector.broadcast %cst_21 : f32 to vector<2x16xf32>
      %47 = arith.addf %46, %45 : vector<2x16xf32>
      %48 = arith.divf %46, %47 : vector<2x16xf32>
      %49 = arith.mulf %40, %arg10 : vector<2x16xf32>
      %50 = arith.mulf %34, %42 : vector<2x16xf32>
      %51 = arith.addf %49, %50 : vector<2x16xf32>
      %52 = math.tanh %51 : vector<2x16xf32>
      %53 = arith.mulf %48, %52 : vector<2x16xf32>
      %cst_22 = arith.constant 5.000000e-01 : f32
      %54 = vector.broadcast %cst_22 : f32 to vector<2x1xf32>
      %55 = arith.cmpf ogt, %25, %54 : vector<2x1xf32>
      %56 = vector.shape_cast %55 : vector<2x1xi1> to vector<2x1xi1>
      %57 = vector.broadcast %56 : vector<2x1xi1> to vector<2x16xi1>
      %58 = arith.select %57, %53, %arg9 : vector<2x16xi1>, vector<2x16xf32>
      %59 = vector.shape_cast %55 : vector<2x1xi1> to vector<2x1xi1>
      %60 = vector.broadcast %59 : vector<2x1xi1> to vector<2x16xi1>
      %61 = arith.select %60, %51, %arg10 : vector<2x16xi1>, vector<2x16xf32>
      %cst_23 = arith.constant 0.000000e+00 : f32
      %62 = vector.broadcast %cst_23 : f32 to vector<2x16xf32>
      %63 = vector.shape_cast %55 : vector<2x1xi1> to vector<2x1xi1>
      %64 = vector.broadcast %63 : vector<2x1xi1> to vector<2x16xi1>
      %65 = arith.select %64, %53, %62 : vector<2x16xi1>, vector<2x16xf32>
      %66 = vector.extract_strided_slice %21 {offsets = [0, 64], sizes = [2, 64], strides = [1, 1]} : vector<2x128xf32> to vector<2x64xf32>
      %67 = arith.index_cast %13 : i32 to index
      %c0_24 = arith.constant 0 : index
      %c0_25 = arith.constant 0 : index
      %68 = vector.load %arg1[%67, %c0_24, %c0_25] : memref<8x2x1xf32, #tpu.memory_space<vmem>>, vector<1x2x1xf32>
      %69 = vector.shape_cast %68 : vector<1x2x1xf32> to vector<2x1xf32>
      %70 = arith.truncf %arg11 : vector<2x16xf32> to vector<2x16xbf16>
      %cst_26 = arith.constant dense<0.000000e+00> : vector<2x64xf32>
      %71 = tpu.matmul %70, %9, %cst_26 {dimension_numbers = #tpu.dot_dimension_numbers<[1], [0], [0], [1], [0, 0, 1, 1], [], []>} : vector<2x16xbf16>, vector<16x64xbf16>, vector<2x64xf32> -> vector<2x64xf32>
      %72 = arith.addf %66, %71 : vector<2x64xf32>
      %73 = vector.extract_strided_slice %72 {offsets = [0, 0], sizes = [2, 16], strides = [1, 1]} : vector<2x64xf32> to vector<2x16xf32>
      %74 = arith.negf %73 : vector<2x16xf32>
      %75 = math.exp %74 : vector<2x16xf32>
      %cst_27 = arith.constant 1.000000e+00 : f32
      %76 = vector.broadcast %cst_27 : f32 to vector<2x16xf32>
      %77 = arith.addf %76, %75 : vector<2x16xf32>
      %78 = arith.divf %76, %77 : vector<2x16xf32>
      %79 = vector.extract_strided_slice %72 {offsets = [0, 16], sizes = [2, 16], strides = [1, 1]} : vector<2x64xf32> to vector<2x16xf32>
      %80 = arith.negf %79 : vector<2x16xf32>
      %81 = math.exp %80 : vector<2x16xf32>
      %cst_28 = arith.constant 1.000000e+00 : f32
      %82 = vector.broadcast %cst_28 : f32 to vector<2x16xf32>
      %83 = arith.addf %82, %81 : vector<2x16xf32>
      %84 = arith.divf %82, %83 : vector<2x16xf32>
      %85 = vector.extract_strided_slice %72 {offsets = [0, 32], sizes = [2, 16], strides = [1, 1]} : vector<2x64xf32> to vector<2x16xf32>
      %86 = math.tanh %85 : vector<2x16xf32>
      %87 = vector.extract_strided_slice %72 {offsets = [0, 48], sizes = [2, 16], strides = [1, 1]} : vector<2x64xf32> to vector<2x16xf32>
      %88 = arith.negf %87 : vector<2x16xf32>
      %89 = math.exp %88 : vector<2x16xf32>
      %cst_29 = arith.constant 1.000000e+00 : f32
      %90 = vector.broadcast %cst_29 : f32 to vector<2x16xf32>
      %91 = arith.addf %90, %89 : vector<2x16xf32>
      %92 = arith.divf %90, %91 : vector<2x16xf32>
      %93 = arith.mulf %84, %arg12 : vector<2x16xf32>
      %94 = arith.mulf %78, %86 : vector<2x16xf32>
      %95 = arith.addf %93, %94 : vector<2x16xf32>
      %96 = math.tanh %95 : vector<2x16xf32>
      %97 = arith.mulf %92, %96 : vector<2x16xf32>
      %cst_30 = arith.constant 5.000000e-01 : f32
      %98 = vector.broadcast %cst_30 : f32 to vector<2x1xf32>
      %99 = arith.cmpf ogt, %69, %98 : vector<2x1xf32>
      %100 = vector.shape_cast %99 : vector<2x1xi1> to vector<2x1xi1>
      %101 = vector.broadcast %100 : vector<2x1xi1> to vector<2x16xi1>
      %102 = arith.select %101, %97, %arg11 : vector<2x16xi1>, vector<2x16xf32>
      %103 = vector.shape_cast %99 : vector<2x1xi1> to vector<2x1xi1>
      %104 = vector.broadcast %103 : vector<2x1xi1> to vector<2x16xi1>
      %105 = arith.select %104, %95, %arg12 : vector<2x16xi1>, vector<2x16xf32>
      %cst_31 = arith.constant 0.000000e+00 : f32
      %106 = vector.broadcast %cst_31 : f32 to vector<2x16xf32>
      %107 = vector.shape_cast %99 : vector<2x1xi1> to vector<2x1xi1>
      %108 = vector.broadcast %107 : vector<2x1xi1> to vector<2x16xi1>
      %109 = arith.select %108, %97, %106 : vector<2x16xi1>, vector<2x16xf32>
      %110 = arith.index_cast %arg8 : i32 to index
      %c0_32 = arith.constant 0 : index
      %c0_33 = arith.constant 0 : index
      %111 = vector.load %arg6[%110, %c0_32, %c0_33] : memref<8x2x32xf32, #tpu.memory_space<vmem>>, vector<1x2x16xf32>
      %112 = vector.shape_cast %111 : vector<1x2x16xf32> to vector<2x16xf32>
      %113 = vector.shape_cast %65 : vector<2x16xf32> to vector<1x2x16xf32>
      tpu.vector_store %arg6[%110, %c0_32, %c0_33], %113 {strides = array<i32>} : memref<8x2x32xf32, #tpu.memory_space<vmem>>, vector<1x2x16xf32>,
      %114 = arith.index_cast %13 : i32 to index
      %c0_34 = arith.constant 0 : index
      %c16 = arith.constant 16 : index
      %115 = vector.load %arg6[%114, %c0_34, %c16] : memref<8x2x32xf32, #tpu.memory_space<vmem>>, vector<1x2x16xf32>
      %116 = vector.shape_cast %115 : vector<1x2x16xf32> to vector<2x16xf32>
      %117 = vector.shape_cast %109 : vector<2x16xf32> to vector<1x2x16xf32>
      tpu.vector_store %arg6[%114, %c0_34, %c16], %117 {strides = array<i32>} : memref<8x2x32xf32, #tpu.memory_space<vmem>>, vector<1x2x16xf32>,
      scf.yield %58, %61, %102, %105 : vector<2x16xf32>, vector<2x16xf32>, vector<2x16xf32>, vector<2x16xf32>
    }
    %c8_i32_12 = arith.constant 8 : i32
    return
  }
}

</mosaic_0001>

<bundles_post_ra>
// kernel: seq_encoder_forward.3
= control target key start
LH: loop header
LB: loop body
LE: loop exit
PB: predicated region body
PF: predicated region fallthrough
CT: control target
= control target key end

     0   :  { %v497_v0 = vmov 0.0   ;;  %vm498_vm0 = vmmov 0   ;;  %vm50_vm1 = vcmask 261120   ;;  %v577_v17 = vmov 0.0   ;;  %s656_s1 = inlined_call_operand.vmem [shape: f32[8,2,1], index: 1, kind: input, shape index: {}]   ;;  %s657_s6 = inlined_call_operand.vmem [shape: f32[8,2,32], index: 6, kind: output, shape index: {}]   ;;  %s658_s2 = inlined_call_operand.vmem [shape: bf16[32,128], index: 2, kind: input, shape index: {}]   ;;  %s659_s0 = inlined_call_operand.vmem [shape: f32[16,32], index: 0, kind: input, shape index: {}]   ;;  %s660_s3 = inlined_call_operand.vmem [shape: bf16[16,64], index: 3, kind: input, shape index: {}]   ;;  %s661_s4 = inlined_call_operand.vmem [shape: bf16[16,64], index: 4, kind: input, shape index: {}]   ;;  %s662_s5 = inlined_call_operand.vmem [shape: f32[1,128], index: 5, kind: input, shape index: {}]  }
   0x1   :  { %367 = vmatprep.subr.bf16.mxu0 %v497_v0  ;;  %v437_v1 = vld [vmem:[%s658_s2] sm:$0xff]   ;;  %371 = vmatprep.mubr.msk.bf16.mxu0 %vm498_vm0, %v497_v0  ;;  %v438_v2 = vld [vmem:[%s658_s2 + $0x8] sm:$0xff]   ;;  %v579_v18 = vmov 0.0   ;;  %v581_v19 = vmov 0.0   ;;  %v583_v20 = vmov 0.0  }
   0x2   :  { %368 = vmatpush3.bf16.msra.mxu0 %v437_v1  ;;  %v24_v3 = vld [vmem:[%s659_s0] sm:$0xff]  ;;  %v25_v4 = vld [vmem:[%s659_s0 + $0x8] sm:$0xff] }
   0x3   :  { %369 = vmatprep.subr.bf16.mxu0 %v497_v0  ;;  %v26_v5 = vpack.c.bf16 %v25_v4, %v24_v3  ;;  %v557_v6 = vld [vmem:[%s660_s3] sm:$0xf]  ;;  %v562_v7 = vld [vmem:[%s660_s3 + $0x4] sm:$0xf]  ;;  %s585_s3 = smov 0  }
   0x4   :  { %v567_v8 = vld [vmem:[%s661_s4] sm:$0xf]  ;;  %v572_v9 = vld [vmem:[%s661_s4 + $0x4] sm:$0xf] }
   0x5   :  { %v348_v10 = vld [vmem:[%s662_s5] ss:$0 sm:$0xff] }
   0x6   :  { %370 = vmatpush3.bf16.msra.mxu0 %v438_v2 }
   0x9   :  { %372 = vmatmul.mubr.msk.bf16.vlgmr.msra.gmra.mrb[0].mxu0 %vm50_vm1, %v26_v5 }
  0xdc   :  { %v88_v11 = vpop.f32.mrb[0].mxu0 }
  0xdd   :  { %v89_v12 = vadd.f32 %v348_v10, %v88_v11  ;;  %v373_v13 = vpop.f32.mrb[1].mxu0 }
  0xde   :  { %v91_v14 = vpop.f32.mrb[2].mxu0 }
  0xdf   :  { %95 = vst [vmem:[#allocation2] sm:$0xff] %v89_v12  ;;  %v92_v15 = vadd.f32 %v348_v10, %v91_v14  ;;  %v374_v16 = vpop.f32.mrb[3].mxu0 }
  0xe1   :  { %96 = vst [vmem:[#allocation2 + $0x8] sm:$0xff] %v92_v15 }
  0xe2 LB: > { %v357_v21 = vcombine.low %v567_v8, %v572_v9  ;;  %v499_v22 = vmov 0.0   ;;  %v210_v23 = vpack.c.bf16 %v483_v18, %v483_v18  ;;  %vm500_vm2 = vmmov 0   ;;  %s501_s4 = smov 16   ;;  %s502_s5 = smov 80   ;;  %s495_s3 = sphi %s585_s3, %s106_s3   ;;  %v491_v20 = vphi %v583_v20, %v205_v20   ;;  %v487_v19 = vphi %v581_v19, %v206_v19   ;;  %v483_v18 = vphi %v579_v18, %v298_v18   ;;  %v479_v17 = vphi %v577_v17, %v299_v17  }
  0xe3   : > { %381 = vmatprep.subr.bf16.mxu1 %v499_v22  ;;  %375 = vmatprep.subr.bf16.mxu0 %v499_v22  ;;  %v354_v24 = vcombine.low %v557_v6, %v562_v7  ;;  %v120_v25 = vpack.c.bf16 %v491_v20, %v491_v20  ;;  %vm130_vm3 = vcmask 130048   ;;  %s613_s13 = sshll.u32 %s495_s3, 1  ;;  %s503_s14 = smov 64   ;;  %v504_v38 = vmov 0  }
  0xe4   : > { %382 = vmatpush3.bf16.msra.mxu1 %v357_v21  ;;  %383 = vmatprep.mubr.msk.bf16.mxu1 %vm500_vm2, %v499_v22  ;;  %s114_s15 = scalar_lea.vmem [#allocation2], %s613_s13  ;;  %s505_s16 = smov 96   ;;  %vm306_vm8 = vcmask 123904   ;;  %vm313_vm9 = vcmask 255104  }
  0xe5   : > { %377 = vmatprep.mubr.msk.bf16.mxu0 %vm500_vm2, %v499_v22  ;;  %212 = vrot.lane.b32.xlu0 %v210_v23, %s501_s4  ;;  %s111_s17 = ssub.s32 7, %s495_s3  ;;  %s118_s22 = scalar_lea.vmem %s656_s1, %s613_s13 }
  0xe6   : > { %376 = vmatpush3.bf16.msra.mxu0 %v354_v24  ;;  %439 = vset.pattern.permute.xlu1 %v504_v38  ;;  %s617_s18 = sshll.u32 %s111_s17, 1  ;;  %v119_v48 = vld [vmem:[%s118_s22] sm:$0x3]  ;;  %s506_s26 = smov 32  }
  0xe7   : > { %440 = vset.pattern.permute.xlu0 %v504_v38  ;;  %s116_s19 = scalar_lea.vmem [#allocation2], %s617_s18  ;;  %vm199_vm4 = vcmp.gt.f32.partialorder %v119_v48, 0.5  ;;  %s208_s25 = scalar_lea.vmem %s656_s1, %s617_s18 }
  0xe8   : > { %v115_v31 = vld [vmem:[%s114_s15] sm:$0x3]  ;;  %v200_v51 = vsel %vm199_vm4, 1, %v504_v38  ;;  %s305_s29 = scalar_lea.vmem %s657_s6, %s613_s13  ;;  %s312_s2 = scalar_lea.vmem %s657_s6, %s617_s18 }
  0xe9   : > { %122 = vrot.lane.b32.xlu0 %v120_v25, %s502_s5  ;;  %v117_v42 = vld [vmem:[%s116_s19] sm:$0x3]  ;;  %s106_s3 = sadd.s32 1, %s495_s3  }
  0xea   : > { %v209_v55 = vld [vmem:[%s208_s25] sm:$0x3]  ;;  %p103_p0 = scmp.ge.s32.totalorder %s106_s3, 8  }
  0xeb   : > { %vm292_vm5 = vcmp.gt.f32.partialorder %v209_v55, 0.5 }
  0xec   : > { %v293_v59 = vsel %vm292_vm5, 1, %v504_v38 }
 0x157   : > { %v213_v26 = vpop.permute.xlu0 %212 }
 0x158   : > { %384 = vmatmul.mubr.msk.bf16.vlgmr.msra.gmra.mrb[0].mxu1 %vm130_vm3, %v213_v26 }
 0x15b   : > { %v123_v27 = vpop.permute.xlu0 %122 }
 0x15c   : > { %378 = vmatmul.mubr.msk.bf16.vlgmr.msra.gmra.mrb[0].mxu0 %vm130_vm3, %v123_v27 }
 0x22b   : > { %v257_v28 = vpop.f32.mrb[0].mxu1 }
 0x22c   : > { %264 = vrot.lane.b32.xlu1 %v257_v28, %s503_s14  ;;  %v385_v29 = vpop.f32.mrb[1].mxu1 }
 0x22d   : > { %v260_v30 = vpop.f32.mrb[2].mxu1 }
 0x22e   : > { %v386_v32 = vpop.f32.mrb[3].mxu1 }
 0x22f   : > { %v168_v33 = vpop.f32.mrb[0].mxu0 }
 0x230   : > { %v174_v34 = vadd.f32 %v168_v33, %v115_v31  ;;  %v379_v35 = vpop.f32.mrb[1].mxu0 }
 0x231   : > { %v171_v36 = vpop.f32.mrb[2].mxu0 }
 0x232   : > { %441 = vtanh.f32 %v174_v34  ;;  %v380_v37 = vpop.f32.mrb[3].mxu0  ;;  %v356_v40 = vmul.f32 -1.442695, %v174_v34 }
 0x234   : > { %443 = vpow2.f32 %v356_v40 }
 0x23c   : > { %v442_v39 = vpop.eup %441 }
 0x23d   : > { %184 = vrot.lane.b32.xlu1 %v442_v39, %s505_s16 }
 0x23e   : > { %v444_v41 = vpop.eup %443 }
 0x23f   : > { %v178_v44 = vadd.f32 1.0, %v444_v41 }
 0x29e   : > { %v265_v43 = vpop.permute.xlu1 %264 }
 0x29f   : > { %v267_v45 = vadd.f32 %v265_v43, %v117_v42 }
 0x2a1   : > { %445 = vtanh.f32 %v267_v45  ;;  %v359_v52 = vmul.f32 -1.442695, %v267_v45 }
 0x2a2   : > { %447 = vrcp.f32 %v178_v44 }
 0x2a3   : > { %449 = vpow2.f32 %v359_v52 }
 0x2ab   : > { %v446_v46 = vpop.eup %445 }
 0x2ac   : > { %277 = vrot.lane.b32.xlu0 %v446_v46, %s505_s16  ;;  %v448_v47 = vpop.eup %447 }
 0x2ad   : > { %v450_v53 = vpop.eup %449  ;;  %v182_v60 = vmul.f32 %v487_v19, %v448_v47 }
 0x2ae   : > { %v271_v54 = vadd.f32 1.0, %v450_v53 }
 0x2af   : > { %v185_v49 = vpop.permute.xlu1 %184 }
 0x2b0   : > { %v187_v50 = vmul.f32 %v448_v47, %v185_v49  ;;  %451 = vrcp.f32 %v271_v54 }
 0x2b2   : > { %189 = vrot.lane.b32.xlu1 %v187_v50, %s501_s4 }
 0x2b6   : > { %202 = vperm.xlu1 %439, %v200_v51  }
 0x2ba   : > { %v452_v56 = vpop.eup %451 }
 0x2bb   : > { %v275_v1 = vmul.f32 %v479_v17, %v452_v56 }
 0x31e   : > { %v278_v57 = vpop.permute.xlu0 %277 }
 0x31f   : > { %v280_v58 = vmul.f32 %v452_v56, %v278_v57 }
 0x321   : > { %282 = vrot.lane.b32.xlu0 %v280_v58, %s501_s4 }
 0x324   : > { %v190_v61 = vpop.permute.xlu1 %189 }
 0x325   : > { %v192_v62 = vadd.f32 %v190_v61, %v182_v60  ;;  %295 = vperm.xlu0 %440, %v293_v59  }
 0x327   : > { %453 = vtanh.f32 %v192_v62 }
 0x331   : > { %v454_v63 = vpop.eup %453 }
 0x332   : > { %195 = vrot.lane.b32.xlu1 %v454_v63, %s506_s26 }
 0x335   : > { %v203_v0 = vpop.permute.xlu1 %202 }
 0x336   : > { %vm204_vm6 = vcmp.eq.s32.totalorder %v203_v0, 1 }
 0x337   : > { %v206_v19 = vsel %vm204_vm6, %v192_v62, %v487_v19  }
 0x393   : > { %v283_v2 = vpop.permute.xlu0 %282 }
 0x394   : > { %v285_v3 = vadd.f32 %v283_v2, %v275_v1 }
 0x396   : > { %455 = vtanh.f32 %v285_v3 }
 0x3a0   : > { %v456_v4 = vpop.eup %455 }
 0x3a1   : > { %288 = vrot.lane.b32.xlu1 %v456_v4, %s506_s26 }
 0x3a4   : > { %v196_v5 = vpop.permute.xlu1 %195  ;;  %v296_v10 = vpop.permute.xlu0 %295 }
 0x3a5   : > { %v198_v11 = vmul.f32 %v448_v47, %v196_v5  ;;  %vm297_vm7 = vcmp.eq.s32.totalorder %v296_v10, 1 }
 0x3a6   : > { %v299_v17 = vsel %vm297_vm7, %v285_v3, %v479_v17  }
 0x3a7   : > { %v205_v20 = vsel %vm204_vm6, %v198_v11, %v491_v20   ;;  %v207_v12 = vsel %vm204_vm6, %v198_v11, 0.0 }
 0x3a8   : > { %302 = vrot.lane.b32.xlu0 %v207_v12, %s502_s5 }
 0x413   : > { %v289_v13 = vpop.permute.xlu1 %288 }
 0x414   : > { %v291_v14 = vmul.f32 %v452_v56, %v289_v13 }
 0x416   : > { %v298_v18 = vsel %vm297_vm7, %v291_v14, %v483_v18   ;;  %v300_v15 = vsel %vm297_vm7, %v291_v14, 0.0 }
 0x417   : > { %309 = vrot.lane.b32.xlu1 %v300_v15, %s506_s26 }
 0x41a   : > { %v303_v16 = vpop.permute.xlu0 %302 }
 0x41b   : > { %307 = vst.msk [vmem:[%s305_s29] sm:$0x3] %vm306_vm8, %v303_v16 }
 0x484   :  { %105 = sbr.rel (!%p103_p0) target bundleno = 226 (0xe2), region = 57 }
 0x489   : > { %v310_v21 = vpop.permute.xlu1 %309 }
 0x48a   : > { %314 = vst.msk [vmem:[%s312_s2] sm:$0x3] %vm313_vm9, %v310_v21 }

</bundles_post_ra>
